<compile_context>
chip_gen: v6e
topology: v6e:2x2x1
jax: 0.10.0
libtpu: 0.0.40
codegen_flags: <defaults>
</compile_context>

<pallas_src>
import jax
import jax.numpy as jnp
from jax import lax
from jax.experimental import pallas as pl
from jax.experimental.pallas import tpu as pltpu


# MXU dot_general dimension numbers (the same forms the TPU flash-attention
# kernels use), so the kernel never emits a standalone transpose:
#   _DIMS_NT : A(m,k) x B(n,k) -> (m,n)    ("A @ B^T", contract minor dims)
#   _DIMS_TN : A(k,m) x B(k,n) -> (m,n)    ("A^T @ B", contract major dims)
_DIMS_NT = (((1,), (1,)), ((), ()))
_DIMS_TN = (((0,), (0,)), ((), ()))


def netvlad_kernel(x_ref, w_ref, b_ref, ct_ref, eye_ref, o_ref):
    """One (TN, D) row tile of NetVLAD, computed lane-dense (rows on lanes).

    x_ref  : (TN, D) natural-layout input rows
    w_ref  : (K, D)  Linear weight (PyTorch out x in layout)
    b_ref  : (K, 1)  Linear bias as a column vector
    ct_ref : (D, K)  clusters^T (tiny, pre-transposed in the wrapper)
    eye_ref: (D, D)  f32 identity, used to do the (TN,D)<->(D,TN) layout change
                     on the MXU instead of with standalone transposes
    o_ref  : (TN, D) natural-layout output rows
    """
    f32 = jnp.float32
    xb = x_ref[...].astype(f32)                              # (TN, D)
    w = w_ref[...].astype(f32)                               # (K, D)
    b = b_ref[...].astype(f32)                               # (K, 1)
    ct = ct_ref[...].astype(f32)                             # (D, K)
    eye = eye_ref[...]                                       # (D, D)

    # Rows-on-lanes: x^T = I @ x^T  ("A @ B^T" form, MXU) -> (D, TN).
    xt = lax.dot_general(eye, xb, _DIMS_NT, preferred_element_type=f32)

    # logits^T = W @ x^T + b   -> (K, TN)
    logits = jnp.dot(w, xt, preferred_element_type=f32) + b

    # Softmax over the K (sublane) axis.  The approx reciprocal is a single
    # per-column scale that cancels under the final L2 normalization.
    m = jnp.max(logits, axis=0, keepdims=True)               # (1, TN)
    e = jnp.exp(logits - m)                                  # (K, TN)  EUP
    denom = jnp.sum(e, axis=0, keepdims=True)                # (1, TN)
    a = e * pl.reciprocal(denom, approx=True)                # (K, TN)  EUP

    # vlad^T[d, n] = x^T[d, n] * sum_k a[k, n] - (C^T @ a)[d, n]
    sum_a = jnp.sum(a, axis=0, keepdims=True)                # (1, TN)
    ac = jnp.dot(ct, a, preferred_element_type=f32)          # (D, TN)  MXU
    vlad = xt * sum_a - ac                                   # (D, TN)

    # F.normalize(dim=-1) over D (sublanes here), eps = 1e-12:
    #   v / max(||v||, 1e-12) == v * rsqrt(max(||v||^2, 1e-24))
    ss = jnp.sum(vlad * vlad, axis=0, keepdims=True)         # (1, TN)
    inv = lax.rsqrt(jnp.maximum(ss, 1e-24))                  # EUP
    vn = vlad * inv                                          # (D, TN)

    # Back to natural layout: out = vn^T = vn^T @ I  ("A^T @ B" form, MXU).
    ob = lax.dot_general(vn, eye, _DIMS_TN, preferred_element_type=f32)  # (TN, D)
    o_ref[...] = ob.astype(o_ref.dtype)


def netvlad(x, weight, bias, clusters, *, tn=8192):
    """x: (N, D), weight: (K, D), bias: (K,), clusters: (K, D) -> (N, D)."""
    N, D = x.shape
    K, _ = clusters.shape

    # Tiny-batch guard: keep every block start in-bounds by padding N up to one
    # 128-row tile.  Only triggers for N < 128, where the pad is negligible;
    # for N >= 128 no padding/copies are done and boundary blocks are handled
    # by Pallas (out-of-bounds rows are dropped on writeback, and any garbage
    # read in the padded region stays confined to its own (discarded) rows).
    if N < 128:
        x_in = jnp.zeros((128, D), x.dtype).at[:N, :].set(x)
    else:
        x_in = x
    n_in = x_in.shape[0]

    # ---- Row-tile selection ---------------------------------------------
    # tn is also the lane dimension of the in-kernel transposed arrays, so it
    # must be a multiple of 128.  Default 8192 -> ~2 MiB of HBM per grid step,
    # amortizing the ~0.35us per-step pipeline overhead.
    tn = max(128, (int(tn) // 128) * 128)
    n_ceil = pl.cdiv(n_in, 128) * 128
    tn = min(tn, n_ceil)                       # don't over-tile tiny inputs
    # v7x megacore: keep >= 2 grid steps when the problem allows, so the
    # "parallel" grid axis can shard across both TensorCores.
    if n_ceil >= 2 * 128 and pl.cdiv(n_in, tn) < 2:
        tn = pl.cdiv(n_ceil, 2 * 128) * 128
    grid = (pl.cdiv(n_in, tn),)

    # Tiny grid-invariant operands prepared once in the wrapper.
    bias_col = bias.reshape(K, 1)
    ct = clusters.T                            # (D, K)
    eye = jnp.eye(D, dtype=jnp.float32)        # (D, D) MXU layout-change helper

    # ---- VMEM budget -------------------------------------------------------
    # Natural (tn, D) in/out blocks are lane-padded to 128 lanes in VMEM
    # (tn*512 B each, double buffered) plus ~2 KiB/row of lane-dense f32
    # temporaries.  tn=8192 -> ~40 MiB: fits every generation (v7x: 64 MiB
    # physical, keep tn <= 8192 there; v5e/v6e: 128 MiB physical).
    vmem_bytes = 4 * tn * 512 + 2048 * tn + (8 << 20)
    vmem_limit = int(min(96 << 20, max(32 << 20, vmem_bytes)))

    # Roofline hint: a few flops per HBM byte -> memory bound on every chip.
    n_work = grid[0] * tn
    flops = n_work * (4 * D * D + 4 * K * D + 8 * (K + D))
    bytes_accessed = 4 * (2 * N * D + 2 * K * D + K + D * D)
    transcendentals = n_work * (K + 2)

    out = pl.pallas_call(
        netvlad_kernel,
        out_shape=jax.ShapeDtypeStruct((n_in, D), x.dtype),
        grid_spec=pltpu.PrefetchScalarGridSpec(
            num_scalar_prefetch=0,
            grid=grid,
            in_specs=[
                pl.BlockSpec((tn, D), lambda i: (i, 0)),   # x row tile (natural)
                pl.BlockSpec((K, D), lambda i: (0, 0)),    # linear weight
                pl.BlockSpec((K, 1), lambda i: (0, 0)),    # bias column
                pl.BlockSpec((D, K), lambda i: (0, 0)),    # clusters^T
                pl.BlockSpec((D, D), lambda i: (0, 0)),    # identity
            ],
            out_specs=pl.BlockSpec((tn, D), lambda i: (i, 0)),
        ),
        compiler_params=pltpu.CompilerParams(
            dimension_semantics=("parallel",),
            vmem_limit_bytes=vmem_limit,
        ),
        cost_estimate=pl.CostEstimate(
            flops=flops,
            transcendentals=transcendentals,
            bytes_accessed=bytes_accessed,
        ),
    )(x_in, weight, bias_col, ct, eye)

    return out[:N] if n_in != N else out


def netvlad_ref(x, weight, bias, clusters):
    # Pure-JAX reference mirroring the PyTorch forward literally.
    logits = x @ weight.T + bias
    a = jax.nn.softmax(logits, axis=-1)                      # (N, K)
    residuals = x[:, None, :] - clusters[None, :, :]         # (N, K, D)
    vlad = (residuals * a[..., None]).sum(axis=1)            # (N, D)
    norm = jnp.maximum(jnp.linalg.norm(vlad, axis=-1, keepdims=True), 1e-12)
    return vlad / norm


if __name__ == "__main__":
    num_clusters = 8    # K
    dim = 32            # D

    key = jax.random.PRNGKey(0)
    k_x, k_c, k_w, k_b, k_x2 = jax.random.split(key, 5)

    # Deterministic synthetic parameters (shapes from NetVLAD.__init__).
    clusters = jax.random.normal(k_c, (num_clusters, dim), dtype=jnp.float32)
    weight = jax.random.normal(k_w, (num_clusters, dim), dtype=jnp.float32) * 0.1
    bias = jax.random.normal(k_b, (num_clusters,), dtype=jnp.float32) * 0.1

    # Case 1: tiny batch (single tile, grid of 1).
    N = 16
    x = jax.random.normal(k_x, (N, dim), dtype=jnp.float32)
    out = jax.block_until_ready(netvlad(x, weight, bias, clusters))
    ref = netvlad_ref(x, weight, bias, clusters)
    assert out.shape == (N, dim)
    assert jnp.allclose(out, ref, rtol=1e-4, atol=2e-5), "mismatch vs reference (N=16)"

    # Case 2: non-multiple-of-128 batch -> 2 grid steps with a partial last
    # block (exercises the >=2-step clamp and Pallas boundary handling).
    N2 = 300
    x2 = jax.random.normal(k_x2, (N2, dim), dtype=jnp.float32)
    out2 = jax.block_until_ready(netvlad(x2, weight, bias, clusters))
    ref2 = netvlad_ref(x2, weight, bias, clusters)
    assert out2.shape == (N2, dim)
    assert jnp.allclose(out2, ref2, rtol=1e-4, atol=2e-5), "mismatch vs reference (N=300)"

    print("KERNEL_OK")
</pallas_src>

<mosaic_0001>
module attributes {stable_mosaic.version = 11 : i64} {
  func.func @netvlad_kernel(%arg0: i32, %arg1: memref<128x32xf32, #tpu.memory_space<vmem>>, %arg2: memref<8x32xf32, #tpu.memory_space<vmem>>, %arg3: memref<8x1xf32, #tpu.memory_space<vmem>>, %arg4: memref<32x8xf32, #tpu.memory_space<vmem>>, %arg5: memref<32x32xf32, #tpu.memory_space<vmem>>, %arg6: memref<128x32xf32, #tpu.memory_space<vmem>>) attributes {dimension_semantics = [#tpu.dimension_semantics<parallel>], iteration_bounds = array<i64: 1>, scalar_prefetch = 0 : i64, scratch_operands = 0 : i64, tpu.core_type = #tpu.core_type<tc>, window_params = [{transform_indices = @transform_0, window_bounds = array<i64: 128, 32>}, {pipeline_mode = #tpu.pipeline_mode<synchronous>, transform_indices = @transform_1, window_bounds = array<i64: 8, 32>}, {pipeline_mode = #tpu.pipeline_mode<synchronous>, transform_indices = @transform_2, window_bounds = array<i64: 8, 1>}, {pipeline_mode = #tpu.pipeline_mode<synchronous>, transform_indices = @transform_3, window_bounds = array<i64: 32, 8>}, {pipeline_mode = #tpu.pipeline_mode<synchronous>, transform_indices = @transform_4, window_bounds = array<i64: 32, 32>}, {transform_indices = @transform_5, window_bounds = array<i64: 128, 32>}]} {
    %c0 = arith.constant 0 : index
    %c0_0 = arith.constant 0 : index
    %0 = vector.load %arg1[%c0, %c0_0] : memref<128x32xf32, #tpu.memory_space<vmem>>, vector<128x32xf32>
    %c0_1 = arith.constant 0 : index
    %c0_2 = arith.constant 0 : index
    %1 = vector.load %arg2[%c0_1, %c0_2] : memref<8x32xf32, #tpu.memory_space<vmem>>, vector<8x32xf32>
    %c0_3 = arith.constant 0 : index
    %c0_4 = arith.constant 0 : index
    %2 = vector.load %arg3[%c0_3, %c0_4] : memref<8x1xf32, #tpu.memory_space<vmem>>, vector<8x1xf32>
    %c0_5 = arith.constant 0 : index
    %c0_6 = arith.constant 0 : index
    %3 = vector.load %arg4[%c0_5, %c0_6] : memref<32x8xf32, #tpu.memory_space<vmem>>, vector<32x8xf32>
    %c0_7 = arith.constant 0 : index
    %c0_8 = arith.constant 0 : index
    %4 = vector.load %arg5[%c0_7, %c0_8] : memref<32x32xf32, #tpu.memory_space<vmem>>, vector<32x32xf32>
    %cst = arith.constant dense<0.000000e+00> : vector<32x128xf32>
    %5 = tpu.matmul %4, %0, %cst {dimension_numbers = #tpu.dot_dimension_numbers<[1], [1], [0], [0], [0, 0, 1, 0], [], []>} : vector<32x32xf32>, vector<128x32xf32>, vector<32x128xf32> -> vector<32x128xf32>
    %cst_9 = arith.constant dense<0.000000e+00> : vector<8x128xf32>
    %6 = tpu.matmul %1, %5, %cst_9 {dimension_numbers = #tpu.dot_dimension_numbers<[1], [0], [0], [1], [0, 0, 1, 1], [], []>} : vector<8x32xf32>, vector<32x128xf32>, vector<8x128xf32> -> vector<8x128xf32>
    %7 = vector.broadcast %2 : vector<8x1xf32> to vector<8x128xf32>
    %8 = arith.addf %6, %7 : vector<8x128xf32>
    %cst_10 = arith.constant dense<0xFF800000> : vector<128xf32>
    %9 = vector.multi_reduction <maximumf>, %8, %cst_10 [0] : vector<8x128xf32> to vector<128xf32>
    %10 = vector.shape_cast %9 : vector<128xf32> to vector<1x128xf32>
    %11 = vector.broadcast %10 : vector<1x128xf32> to vector<8x128xf32>
    %12 = arith.subf %8, %11 : vector<8x128xf32>
    %13 = math.exp %12 : vector<8x128xf32>
    %cst_11 = arith.constant dense<0.000000e+00> : vector<128xf32>
    %14 = vector.multi_reduction <add>, %13, %cst_11 [0] : vector<8x128xf32> to vector<128xf32>
    %15 = vector.shape_cast %14 : vector<128xf32> to vector<1x128xf32>
    %16 = tpu.reciprocal %15 {approx = true} : vector<1x128xf32> -> vector<1x128xf32>
    %17 = vector.broadcast %16 : vector<1x128xf32> to vector<8x128xf32>
    %18 = arith.mulf %13, %17 : vector<8x128xf32>
    %cst_12 = arith.constant dense<0.000000e+00> : vector<128xf32>
    %19 = vector.multi_reduction <add>, %18, %cst_12 [0] : vector<8x128xf32> to vector<128xf32>
    %20 = vector.shape_cast %19 : vector<128xf32> to vector<1x128xf32>
    %cst_13 = arith.constant dense<0.000000e+00> : vector<32x128xf32>
    %21 = tpu.matmul %3, %18, %cst_13 {dimension_numbers = #tpu.dot_dimension_numbers<[1], [0], [0], [1], [0, 0, 1, 1], [], []>} : vector<32x8xf32>, vector<8x128xf32>, vector<32x128xf32> -> vector<32x128xf32>
    %22 = vector.broadcast %20 : vector<1x128xf32> to vector<32x128xf32>
    %23 = arith.mulf %5, %22 : vector<32x128xf32>
    %24 = arith.subf %23, %21 : vector<32x128xf32>
    %25 = arith.mulf %24, %24 : vector<32x128xf32>
    %cst_14 = arith.constant dense<0.000000e+00> : vector<128xf32>
    %26 = vector.multi_reduction <add>, %25, %cst_14 [0] : vector<32x128xf32> to vector<128xf32>
    %27 = vector.shape_cast %26 : vector<128xf32> to vector<1x128xf32>
    %cst_15 = arith.constant 1.000000e-24 : f32
    %28 = vector.broadcast %cst_15 : f32 to vector<1x128xf32>
    %29 = arith.maximumf %27, %28 : vector<1x128xf32>
    %30 = math.rsqrt %29 : vector<1x128xf32>
    %31 = vector.broadcast %30 : vector<1x128xf32> to vector<32x128xf32>
    %32 = arith.mulf %24, %31 : vector<32x128xf32>
    %cst_16 = arith.constant dense<0.000000e+00> : vector<128x32xf32>
    %33 = tpu.matmul %32, %4, %cst_16 {dimension_numbers = #tpu.dot_dimension_numbers<[0], [0], [1], [1], [0, 1, 1, 1], [], []>} : vector<32x128xf32>, vector<32x32xf32>, vector<128x32xf32> -> vector<128x32xf32>
    %c0_17 = arith.constant 0 : index
    %c0_18 = arith.constant 0 : index
    %34 = vector.load %arg6[%c0_17, %c0_18] : memref<128x32xf32, #tpu.memory_space<vmem>>, vector<128x32xf32>
    tpu.vector_store %arg6[%c0_17, %c0_18], %33 {strides = array<i32>} : memref<128x32xf32, #tpu.memory_space<vmem>>, vector<128x32xf32>,
    return
  }
  func.func @transform_0(%arg0: i32) -> (i32, i32) {
    %c0_i32 = arith.constant 0 : i32
    %c0_i32_0 = arith.constant 0 : i32
    return %arg0, %c0_i32 : i32, i32
  }
  func.func @transform_1(%arg0: i32) -> (i32, i32) {
    %c0_i32 = arith.constant 0 : i32
    %c0_i32_0 = arith.constant 0 : i32
    %c0_i32_1 = arith.constant 0 : i32
    return %c0_i32, %c0_i32_0 : i32, i32
  }
  func.func @transform_2(%arg0: i32) -> (i32, i32) {
    %c0_i32 = arith.constant 0 : i32
    %c0_i32_0 = arith.constant 0 : i32
    %c0_i32_1 = arith.constant 0 : i32
    return %c0_i32, %c0_i32_0 : i32, i32
  }
  func.func @transform_3(%arg0: i32) -> (i32, i32) {
    %c0_i32 = arith.constant 0 : i32
    %c0_i32_0 = arith.constant 0 : i32
    %c0_i32_1 = arith.constant 0 : i32
    return %c0_i32, %c0_i32_0 : i32, i32
  }
  func.func @transform_4(%arg0: i32) -> (i32, i32) {
    %c0_i32 = arith.constant 0 : i32
    %c0_i32_0 = arith.constant 0 : i32
    %c0_i32_1 = arith.constant 0 : i32
    return %c0_i32, %c0_i32_0 : i32, i32
  }
  func.func @transform_5(%arg0: i32) -> (i32, i32) {
    %c0_i32 = arith.constant 0 : i32
    %c0_i32_0 = arith.constant 0 : i32
    return %arg0, %c0_i32 : i32, i32
  }
}

</mosaic_0001>

<bundles_post_ra>
// kernel: tpu_custom_call.1
= control target key start
LH: loop header
LB: loop body
LE: loop exit
PB: predicated region body
PF: predicated region fallthrough
CT: control target
= control target key end

     0   :  { %vm46_vm0 = vcmask 261120   ;;  %v853_v20 = vmov 0.0   ;;  %vm854_vm1 = vmmov 0   ;;  %v855_v21 = vmov 0   ;;  %s1116_s0 = inlined_call_operand.vmem [shape: f32[128,32], index: 0, kind: input, shape index: {}]   ;;  %s1117_s4 = inlined_call_operand.vmem [shape: f32[32,32], index: 4, kind: input, shape index: {}]   ;;  %s1118_s2 = inlined_call_operand.vmem [shape: f32[8,1], index: 2, kind: input, shape index: {}]   ;;  %s1119_s1 = inlined_call_operand.vmem [shape: f32[8,32], index: 1, kind: input, shape index: {}]   ;;  %s1120_s3 = inlined_call_operand.vmem [shape: f32[32,8], index: 3, kind: input, shape index: {}]   ;;  %s1121_s5 = inlined_call_operand.vmem [shape: f32[128,32], index: 5, kind: output, shape index: {}]  }
   0x1   :  { %v35_v0 = vld [vmem:[%s1116_s0 + $0x78] sm:$0xff]  ;;  %v34_v1 = vld [vmem:[%s1116_s0 + $0x70] sm:$0xff]  ;;  %v33_v2 = vld [vmem:[%s1116_s0 + $0x68] sm:$0xff]  ;;  %792 = vmatprep.subr.mxu1 %v853_v20  ;;  %800 = vmatprep.mubr.msk.f32.mxu1 %vm854_vm1, %v853_v20  ;;  %vm293_vm2 = vcmask 64512  }
   0x2   :  { %754 = vmatprep.subr.msk.mxu0 %vm46_vm0, %v35_v0  ;;  %v901_v3 = vld [vmem:[%s1117_s4] sm:$0xff]  ;;  %v31_v5 = vld [vmem:[%s1116_s0 + $0x58] sm:$0xff]  ;;  %v30_v6 = vld [vmem:[%s1116_s0 + $0x50] sm:$0xff]  ;;  %846 = vset.pattern.permute.xlu0 %v855_v21 }
   0x3   :  { %755 = vmatpush3.xpose.msk.msra.mxu0 %vm46_vm0, %v35_v0  ;;  %786 = vmatprep.mubr.msk.f32.mxu0 %vm46_vm0, %v901_v3  ;;  %v32_v4 = vld [vmem:[%s1116_s0 + $0x60] sm:$0xff]  ;;  %v29_v7 = vld [vmem:[%s1116_s0 + $0x48] sm:$0xff]  ;;  %v27_v9 = vld [vmem:[%s1116_s0 + $0x38] sm:$0xff] }
   0x4   :  { %756 = vmatprep.subr.msk.mxu0 %vm46_vm0, %v34_v1  ;;  %v28_v8 = vld [vmem:[%s1116_s0 + $0x40] sm:$0xff]  ;;  %v26_v10 = vld [vmem:[%s1116_s0 + $0x30] sm:$0xff]  ;;  %v25_v11 = vld [vmem:[%s1116_s0 + $0x28] sm:$0xff] }
   0x5   :  { %v24_v12 = vld [vmem:[%s1116_s0 + $0x20] sm:$0xff]  ;;  %v23_v13 = vld [vmem:[%s1116_s0 + $0x18] sm:$0xff]  ;;  %v22_v14 = vld [vmem:[%s1116_s0 + $0x10] sm:$0xff] }
   0x6   :  { %v21_v15 = vld [vmem:[%s1116_s0 + $0x8] sm:$0xff]  ;;  %v20_v16 = vld [vmem:[%s1116_s0] sm:$0xff]  ;;  %v981_v18 = vld [vmem:[%s1117_s4 + $0x10] sm:$0xff] }
   0x7   :  { %757 = vmatpush3.xpose.msk.msra.mxu0 %vm46_vm0, %v34_v1  ;;  %v976_v17 = vld [vmem:[%s1117_s4 + $0x8] sm:$0xff]  ;;  %v45_v19 = vld [vmem:[%s1117_s4 + $0x18] sm:$0xff]  ;;  %v37_v22 = vld [vmem:[%s1118_s2] sm:$0xff] }
   0x8   :  { %758 = vmatprep.subr.msk.mxu0 %vm46_vm0, %v33_v2  ;;  %194 = vperm.xlu0 %846, %v37_v22   ;;  %v36_v27 = vld [vmem:[%s1119_s1] sm:$0xff]  ;;  %v39_v50 = vld [vmem:[%s1120_s3 + $0x8] sm:$0xff]  ;;  %v40_v51 = vld [vmem:[%s1120_s3 + $0x10] sm:$0xff] }
   0x9   :  { %v38_v28 = vld [vmem:[%s1120_s3] sm:$0xff]  ;;  %v41_v52 = vld [vmem:[%s1120_s3 + $0x18] sm:$0xff] }
   0xb   :  { %759 = vmatpush3.xpose.msk.msra.mxu0 %vm46_vm0, %v33_v2 }
   0xc   :  { %760 = vmatprep.subr.msk.mxu0 %vm46_vm0, %v32_v4 }
   0xf   :  { %761 = vmatpush3.xpose.msk.msra.mxu0 %vm46_vm0, %v32_v4 }
  0x10   :  { %762 = vmatprep.subr.msk.mxu0 %vm46_vm0, %v31_v5 }
  0x13   :  { %763 = vmatpush3.xpose.msk.msra.mxu0 %vm46_vm0, %v31_v5 }
  0x14   :  { %764 = vmatprep.subr.msk.mxu0 %vm46_vm0, %v30_v6 }
  0x17   :  { %765 = vmatpush3.xpose.msk.msra.mxu0 %vm46_vm0, %v30_v6 }
  0x18   :  { %766 = vmatprep.subr.msk.mxu0 %vm46_vm0, %v29_v7 }
  0x1b   :  { %767 = vmatpush3.xpose.msk.msra.mxu0 %vm46_vm0, %v29_v7 }
  0x1c   :  { %768 = vmatprep.subr.msk.mxu0 %vm46_vm0, %v28_v8 }
  0x1f   :  { %769 = vmatpush3.xpose.msk.msra.mxu0 %vm46_vm0, %v28_v8 }
  0x20   :  { %770 = vmatprep.subr.msk.mxu0 %vm46_vm0, %v27_v9 }
  0x23   :  { %771 = vmatpush3.xpose.msk.msra.mxu0 %vm46_vm0, %v27_v9 }
  0x24   :  { %772 = vmatprep.subr.msk.mxu0 %vm46_vm0, %v26_v10 }
  0x27   :  { %773 = vmatpush3.xpose.msk.msra.mxu0 %vm46_vm0, %v26_v10 }
  0x28   :  { %774 = vmatprep.subr.msk.mxu0 %vm46_vm0, %v25_v11 }
  0x2b   :  { %775 = vmatpush3.xpose.msk.msra.mxu0 %vm46_vm0, %v25_v11 }
  0x2c   :  { %776 = vmatprep.subr.msk.mxu0 %vm46_vm0, %v24_v12 }
  0x2f   :  { %777 = vmatpush3.xpose.msk.msra.mxu0 %vm46_vm0, %v24_v12 }
  0x30   :  { %778 = vmatprep.subr.msk.mxu0 %vm46_vm0, %v23_v13 }
  0x33   :  { %779 = vmatpush3.xpose.msk.msra.mxu0 %vm46_vm0, %v23_v13 }
  0x34   :  { %780 = vmatprep.subr.msk.mxu0 %vm46_vm0, %v22_v14 }
  0x37   :  { %781 = vmatpush3.xpose.msk.msra.mxu0 %vm46_vm0, %v22_v14 }
  0x38   :  { %782 = vmatprep.subr.msk.mxu0 %vm46_vm0, %v21_v15 }
  0x3b   :  { %783 = vmatpush3.xpose.msk.msra.mxu0 %vm46_vm0, %v21_v15 }
  0x3c   :  { %784 = vmatprep.subr.msk.mxu0 %vm46_vm0, %v20_v16 }
  0x3f   :  { %785 = vmatpush3.xpose.msk.msra.mxu0 %vm46_vm0, %v20_v16 }
  0x42   :  { %787 = vmatmul.mubr.msk.f32.vlgmr.msra.gmra.mxu0 %vm46_vm0, %v976_v17 }
  0x43   :  { %789 = vmatprep.mubr.msk.f32.mxu0 %vm46_vm0, %v981_v18 }
  0x46   :  { %790 = vmatmul.mubr.msk.f32.gmra.mxu0 %vm46_vm0, %v45_v19 }
  0x83   :  { %v195_v29 = vpop.permute.xlu0 %194 }
 0x102   :  { %v994_v23 = vpop.f32.mrf.mxu0 }
 0x104   :  { %v996_v24 = vpop.f32.mrf.mxu0 }
 0x106   :  { %v998_v25 = vpop.f32.mrf.mxu0 }
 0x107   :  { %793 = vmatpush3.msra.mxu1 %v998_v25 }
 0x108   :  { %v1001_v26 = vpop.f32.mrf.mxu0  ;;  %794 = vmatprep.subr.mxu1 %v853_v20 }
 0x109   :  { %795 = vmatpush3.msra.mxu1 %v1001_v26 }
 0x10a   :  { %796 = vmatprep.subr.mxu1 %v853_v20 }
 0x10b   :  { %797 = vmatpush3.msra.mxu1 %v994_v23 }
 0x10c   :  { %798 = vmatprep.subr.mxu1 %v853_v20 }
 0x10d   :  { %799 = vmatpush3.msra.mxu1 %v996_v24 }
 0x10e   :  { %801 = vmatmul.mubr.msk.f32.vlgmr.msra.gmra.mxu1 %vm46_vm0, %v36_v27 }
 0x10f   :  { %805 = vmatprep.mubr.msk.f32.mxu1 %vm293_vm2, %v38_v28 }
 0x1ce   :  { %v266_v30 = vpop.f32.mrf.mxu1 }
 0x1cf   :  { %v267_v31 = vadd.f32 %v266_v30, %v195_v29 }
 0x1d0   :  { %v802_v32 = vpop.f32.mrf.mxu1 }
 0x1d1   :  { %v270_v33 = vrot.slane %v267_v31, 4 }
 0x1d3   :  { %v271_v34 = vmax.f32 %v267_v31, %v270_v33 }
 0x1d5   :  { %v272_v35 = vrot.slane %v271_v34, 2 }
 0x1d7   :  { %v273_v36 = vmax.f32 %v271_v34, %v272_v35 }
 0x1d9   :  { %v274_v37 = vrot.slane %v273_v36, 1 }
 0x1db   :  { %v275_v38 = vmax.f32 %v273_v36, %v274_v37 }
 0x1dd   :  { %v276_v39 = vsub.f32 %v267_v31, %v275_v38 }
 0x1df   :  { %v277_v40 = vmul.f32 1.442695, %v276_v39 }
 0x1e1   :  { %847 = vpow2.f32 %v277_v40 }
 0x1ee   :  { %v848_v41 = vpop.eup %847 }
 0x1ef   :  { %v279_v42 = vrot.slane %v848_v41, 4 }
 0x1f1   :  { %v280_v43 = vadd.f32 %v848_v41, %v279_v42 }
 0x1f3   :  { %v281_v44 = vrot.slane %v280_v43, 2 }
 0x1f5   :  { %v282_v45 = vadd.f32 %v281_v44, %v280_v43 }
 0x1f7   :  { %v283_v46 = vrot.slane %v282_v45, 1 }
 0x1f9   :  { %v284_v47 = vadd.f32 %v283_v46, %v282_v45 }
 0x1fb   :  { %849 = vrcp.f32 %v284_v47 }
 0x208   :  { %v850_v48 = vpop.eup %849 }
 0x209   :  { %v286_v49 = vmul.f32 %v850_v48, %v848_v41 }
 0x20b   :  { %803 = vmatprep.subr.mxu1 %v286_v49  ;;  %v287_v53 = vrot.slane %v286_v49, 4 }
 0x20c   :  { %804 = vmatpush3.msra.mxu1 %v286_v49 }
 0x20d   :  { %806 = vmatmul.mubr.msk.f32.vlgmr.msra.gmra.mxu1 %vm293_vm2, %v39_v50  ;;  %811 = vmatprep.subr.mxu1 %v45_v19  ;;  %v288_v54 = vadd.f32 %v287_v53, %v286_v49 }
 0x20e   :  { %808 = vmatprep.mubr.msk.f32.mxu1 %vm293_vm2, %v40_v51  ;;  %812 = vmatpush3.msra.mxu1 %v45_v19 }
 0x20f   :  { %813 = vmatprep.subr.mxu1 %v981_v18  ;;  %v289_v55 = vrot.slane %v288_v54, 2 }
 0x210   :  { %814 = vmatpush3.msra.mxu1 %v981_v18 }
 0x211   :  { %809 = vmatmul.mubr.msk.f32.gmra.mxu1 %vm293_vm2, %v41_v52  ;;  %815 = vmatprep.subr.mxu1 %v976_v17  ;;  %v290_v56 = vadd.f32 %v289_v55, %v288_v54 }
 0x212   :  { %816 = vmatpush3.msra.mxu1 %v976_v17 }
 0x213   :  { %817 = vmatprep.subr.mxu1 %v901_v3  ;;  %v291_v57 = vrot.slane %v290_v56, 1 }
 0x214   :  { %818 = vmatpush3.msra.mxu1 %v901_v3 }
 0x215   :  { %v292_v58 = vadd.f32 %v291_v57, %v290_v56 }
 0x217   :  { %v392_v60 = vmul.f32 %v994_v23, %v292_v58  ;;  %v391_v61 = vmul.f32 %v292_v58, %v996_v24  ;;  %v394_v4 = vmul.f32 %v998_v25, %v292_v58  ;;  %v393_v3 = vmul.f32 %v292_v58, %v1001_v26 }
 0x2cd   :  { %v807_v59 = vpop.f32.mrf.mxu1 }
 0x2ce   :  { %v396_v63 = vsub.f32 %v392_v60, %v807_v59 }
 0x2cf   :  { %v372_v62 = vpop.f32.mrf.mxu1 }
 0x2d0   :  { %v395_v0 = vsub.f32 %v391_v61, %v372_v62  ;;  %v400_v6 = vmul.f32 %v396_v63, %v396_v63 }
 0x2d1   :  { %v810_v1 = vpop.f32.mrf.mxu1 }
 0x2d2   :  { %v399_v2 = vmul.f32 %v395_v0, %v395_v0  ;;  %v398_v7 = vsub.f32 %v394_v4, %v810_v1 }
 0x2d3   :  { %v382_v5 = vpop.f32.mrf.mxu1 }
 0x2d4   :  { %v397_v8 = vsub.f32 %v393_v3, %v382_v5  ;;  %v403_v9 = vadd.f32 %v400_v6, %v399_v2  ;;  %v402_v11 = vmul.f32 %v398_v7, %v398_v7 }
 0x2d6   :  { %v401_v10 = vmul.f32 %v397_v8, %v397_v8 }
 0x2d8   :  { %v404_v12 = vadd.f32 %v403_v9, %v401_v10 }
 0x2da   :  { %v405_v13 = vadd.f32 %v404_v12, %v402_v11 }
 0x2dc   :  { %v406_v14 = vrot.slane %v405_v13, 4 }
 0x2de   :  { %v407_v15 = vadd.f32 %v406_v14, %v405_v13 }
 0x2e0   :  { %v408_v16 = vrot.slane %v407_v15, 2 }
 0x2e2   :  { %v409_v17 = vadd.f32 %v408_v16, %v407_v15 }
 0x2e4   :  { %v410_v18 = vrot.slane %v409_v17, 1 }
 0x2e6   :  { %v411_v19 = vadd.f32 %v410_v18, %v409_v17 }
 0x2e8   :  { %v412_v20 = vmax.f32 %v411_v19, 1e-24 }
 0x2ea   :  { %851 = vrsqrt.f32 %v412_v20 }
 0x2f7   :  { %v852_v21 = vpop.eup %851 }
 0x2f8   :  { %v414_v22 = vmul.f32 %v852_v21, %v395_v0  ;;  %v415_v23 = vmul.f32 %v852_v21, %v396_v63  ;;  %v416_v24 = vmul.f32 %v852_v21, %v397_v8  ;;  %v417_v25 = vmul.f32 %v852_v21, %v398_v7 }
 0x2fa   :  { %418 = vxpose.xlu0.b32.start [1/4] (short) %v414_v22, 128 }
 0x2fe   :  { %419 = vxpose.xlu0.b32.cont [2/4] (short) %v415_v23, 128 }
 0x302   :  { %420 = vxpose.xlu0.b32.cont [3/4] (short) %v416_v24, 128 }
 0x306   :  { %421 = vxpose.xlu0.b32.end [4/4] (short) %v417_v25, 128 }
 0x376   :  { %v434_v26 = vpop.trf.xlu0 }
 0x377   :  { %819 = vmatprep.mubr.msk.f32.mxu1 %vm46_vm0, %v434_v26 }
 0x37a   :  { %v435_v27 = vpop.trf.xlu0 }
 0x37b   :  { %820 = vmatmul.mubr.msk.f32.vlgmr.msra.gmra.mxu1 %vm46_vm0, %v435_v27 }
 0x37e   :  { %v436_v28 = vpop.trf.xlu0 }
 0x37f   :  { %822 = vmatprep.mubr.msk.f32.mxu1 %vm46_vm0, %v436_v28 }
 0x382   :  { %v437_v29 = vpop.trf.xlu0 }
 0x383   :  { %823 = vmatmul.mubr.msk.f32.gmra.mxu1 %vm46_vm0, %v437_v29 }
 0x386   :  { %v438_v30 = vpop.trf.xlu0 }
 0x387   :  { %825 = vmatprep.mubr.msk.f32.mxu1 %vm46_vm0, %v438_v30 }
 0x38a   :  { %v439_v31 = vpop.trf.xlu0 }
 0x38b   :  { %826 = vmatmul.mubr.msk.f32.gmra.mxu1 %vm46_vm0, %v439_v31 }
 0x38e   :  { %v440_v32 = vpop.trf.xlu0 }
 0x38f   :  { %828 = vmatprep.mubr.msk.f32.mxu1 %vm46_vm0, %v440_v32 }
 0x392   :  { %v441_v33 = vpop.trf.xlu0 }
 0x393   :  { %829 = vmatmul.mubr.msk.f32.gmra.mxu1 %vm46_vm0, %v441_v33 }
 0x396   :  { %v442_v34 = vpop.trf.xlu0 }
 0x397   :  { %831 = vmatprep.mubr.msk.f32.mxu1 %vm46_vm0, %v442_v34 }
 0x39a   :  { %v443_v35 = vpop.trf.xlu0 }
 0x39b   :  { %832 = vmatmul.mubr.msk.f32.gmra.mxu1 %vm46_vm0, %v443_v35 }
 0x39e   :  { %v444_v36 = vpop.trf.xlu0 }
 0x39f   :  { %834 = vmatprep.mubr.msk.f32.mxu1 %vm46_vm0, %v444_v36 }
 0x3a2   :  { %v445_v37 = vpop.trf.xlu0 }
 0x3a3   :  { %835 = vmatmul.mubr.msk.f32.gmra.mxu1 %vm46_vm0, %v445_v37 }
 0x3a6   :  { %v446_v38 = vpop.trf.xlu0 }
 0x3a7   :  { %837 = vmatprep.mubr.msk.f32.mxu1 %vm46_vm0, %v446_v38 }
 0x3aa   :  { %v447_v39 = vpop.trf.xlu0 }
 0x3ab   :  { %838 = vmatmul.mubr.msk.f32.gmra.mxu1 %vm46_vm0, %v447_v39 }
 0x3ae   :  { %v448_v40 = vpop.trf.xlu0 }
 0x3af   :  { %840 = vmatprep.mubr.msk.f32.mxu1 %vm46_vm0, %v448_v40 }
 0x3b2   :  { %v449_v41 = vpop.trf.xlu0 }
 0x3b3   :  { %841 = vmatmul.mubr.msk.f32.gmra.mxu1 %vm46_vm0, %v449_v41 }
 0x43b   :  { %v821_v42 = vpop.f32.mrf.mxu1 }
 0x43c   :  { %644 = vst.msk [vmem:[%s1121_s5 + $0x8] sm:$0xff] %vm46_vm0, %v821_v42 }
 0x43d   :  { %v564_v43 = vpop.f32.mrf.mxu1 }
 0x43e   :  { %643 = vst.msk [vmem:[%s1121_s5] sm:$0xff] %vm46_vm0, %v564_v43 }
 0x443   :  { %v824_v44 = vpop.f32.mrf.mxu1 }
 0x444   :  { %646 = vst.msk [vmem:[%s1121_s5 + $0x18] sm:$0xff] %vm46_vm0, %v824_v44 }
 0x445   :  { %v574_v45 = vpop.f32.mrf.mxu1 }
 0x446   :  { %645 = vst.msk [vmem:[%s1121_s5 + $0x10] sm:$0xff] %vm46_vm0, %v574_v45 }
 0x44b   :  { %v827_v46 = vpop.f32.mrf.mxu1 }
 0x44c   :  { %648 = vst.msk [vmem:[%s1121_s5 + $0x28] sm:$0xff] %vm46_vm0, %v827_v46 }
 0x44d   :  { %v584_v47 = vpop.f32.mrf.mxu1 }
 0x44e   :  { %647 = vst.msk [vmem:[%s1121_s5 + $0x20] sm:$0xff] %vm46_vm0, %v584_v47 }
 0x453   :  { %v830_v48 = vpop.f32.mrf.mxu1 }
 0x454   :  { %650 = vst.msk [vmem:[%s1121_s5 + $0x38] sm:$0xff] %vm46_vm0, %v830_v48 }
 0x455   :  { %v594_v49 = vpop.f32.mrf.mxu1 }
 0x456   :  { %649 = vst.msk [vmem:[%s1121_s5 + $0x30] sm:$0xff] %vm46_vm0, %v594_v49 }
 0x45b   :  { %v833_v50 = vpop.f32.mrf.mxu1 }
 0x45c   :  { %652 = vst.msk [vmem:[%s1121_s5 + $0x48] sm:$0xff] %vm46_vm0, %v833_v50 }
 0x45d   :  { %v604_v51 = vpop.f32.mrf.mxu1 }
 0x45e   :  { %651 = vst.msk [vmem:[%s1121_s5 + $0x40] sm:$0xff] %vm46_vm0, %v604_v51 }
 0x463   :  { %v836_v52 = vpop.f32.mrf.mxu1 }
 0x464   :  { %654 = vst.msk [vmem:[%s1121_s5 + $0x58] sm:$0xff] %vm46_vm0, %v836_v52 }
 0x465   :  { %v614_v53 = vpop.f32.mrf.mxu1 }
 0x466   :  { %653 = vst.msk [vmem:[%s1121_s5 + $0x50] sm:$0xff] %vm46_vm0, %v614_v53 }
 0x46b   :  { %v839_v54 = vpop.f32.mrf.mxu1 }
 0x46c   :  { %656 = vst.msk [vmem:[%s1121_s5 + $0x68] sm:$0xff] %vm46_vm0, %v839_v54 }
 0x46d   :  { %v624_v55 = vpop.f32.mrf.mxu1 }
 0x46e   :  { %655 = vst.msk [vmem:[%s1121_s5 + $0x60] sm:$0xff] %vm46_vm0, %v624_v55 }
 0x473   :  { %v842_v56 = vpop.f32.mrf.mxu1 }
 0x474   :  { %658 = vst.msk [vmem:[%s1121_s5 + $0x78] sm:$0xff] %vm46_vm0, %v842_v56 }
 0x475   :  { %v634_v57 = vpop.f32.mrf.mxu1 }
 0x476   :  { %657 = vst.msk [vmem:[%s1121_s5 + $0x70] sm:$0xff] %vm46_vm0, %v634_v57 }

</bundles_post_ra>
